<compile_context>
chip_gen: v6e
topology: v6e:2x2x1
jax: 0.10.0
libtpu: 0.0.40
codegen_flags: <defaults>
</compile_context>

<pallas_src>
import jax
import jax.numpy as jnp
from jax.experimental import pallas as pl
from jax.experimental.pallas import tpu as pltpu

BN_EPS = 1e-5


def _round_up(n, m):
    return (n + m - 1) // m * m


def _pad2(a, shape, fill=0.0):
    """Pad a 2-D array up to `shape` (bottom/right) with `fill`."""
    pr = shape[0] - a.shape[0]
    pc = shape[1] - a.shape[1]
    if pr == 0 and pc == 0:
        return a
    return jnp.pad(a, ((0, pr), (0, pc)), constant_values=fill)


def _make_kernel(batch, h1p, h2p, ap):
    inv_b = 1.0 / batch

    def _bn_relu(h, gamma, beta):
        """BatchNorm1d (training-mode batch stats) + affine + ReLU, fused.

        One reduction pass for the stats, then one mul + one add + relu on the
        (B, F) tile.  Padded (all-zero) feature columns stay exactly zero:
        mean = var = 0, gamma = 0 -> scale = 0 -> h*scale + shift = 0.
        """
        mean = jnp.sum(h, axis=0, keepdims=True) * inv_b
        m2 = jnp.sum(h * h, axis=0, keepdims=True) * inv_b
        var = jnp.maximum(m2 - mean * mean, 0.0)        # clamp: avoid rsqrt NaN
        scale = gamma * jax.lax.rsqrt(var + BN_EPS)     # (1, F)
        shift = beta - mean * scale                     # (1, F)
        return jnp.maximum(h * scale + shift, 0.0)

    def kernel(x_ref, w1_ref, w2_ref, w3_ref, vec_ref, o_ref):
        # vec_ref rows: 0=gamma1, 1=beta1, 2=gamma2, 3=beta2, 4=output bias.
        x = x_ref[...]                                   # already matmul dtype
        # Layer 1: Linear (pre-BN bias dropped: cancels in BN) -> BN -> ReLU
        h = jnp.dot(x, w1_ref[...], preferred_element_type=jnp.float32)
        h = _bn_relu(h, vec_ref[0:1, 0:h1p], vec_ref[1:2, 0:h1p])
        # Layer 2
        h = jnp.dot(h.astype(w2_ref.dtype), w2_ref[...],
                    preferred_element_type=jnp.float32)
        h = _bn_relu(h, vec_ref[2:3, 0:h2p], vec_ref[3:4, 0:h2p])
        # Output layer (bias kept)
        out = jnp.dot(h.astype(w3_ref.dtype), w3_ref[...],
                      preferred_element_type=jnp.float32)
        out = out + vec_ref[4:5, 0:ap]
        o_ref[...] = out.astype(o_ref.dtype)

    return kernel


def prepare_params(params, matmul_dtype=jnp.float32):
    """One-time parameter prep (pad / cast / pack) — hoisted out of the call path.

    Weights are pre-transposed to (in, out) (done in init_params) and padded so
    every hidden/action dim is a multiple of 128 (lane-dense loads/stores).
    The five per-feature vectors are packed into one (8, Fmax) f32 slab.
    """
    (w1, b1, g1, be1), (w2, b2, g2, be2), (w3, b3) = params
    del b1, b2  # pre-BN biases cancel exactly against the batch-mean subtraction

    f0 = w1.shape[0]
    h1, h2, action_size = w1.shape[1], w2.shape[1], w3.shape[1]
    h1p, h2p, ap = (_round_up(d, 128) for d in (h1, h2, action_size))
    fmax = max(h1p, h2p, ap)

    w1p = _pad2(w1, (f0, h1p)).astype(matmul_dtype)
    w2p = _pad2(w2, (h1p, h2p)).astype(matmul_dtype)
    w3p = _pad2(w3, (h2p, ap)).astype(matmul_dtype)

    vec = jnp.zeros((8, fmax), jnp.float32)
    vec = vec.at[0, :h1].set(g1[0])
    vec = vec.at[1, :h1].set(be1[0])
    vec = vec.at[2, :h2].set(g2[0])
    vec = vec.at[3, :h2].set(be2[0])
    vec = vec.at[4, :action_size].set(b3[0])

    prepared = (jax.device_put(w1p), jax.device_put(w2p),
                jax.device_put(w3p), jax.device_put(vec))
    dims = dict(f0=f0, h1p=h1p, h2p=h2p, ap=ap, action_size=action_size)
    return prepared, dims


def make_rl_module_fn(params, matmul_dtype=jnp.float32):
    """Returns a jitted `x -> logits (B, action_size)` closure over padded params.

    matmul_dtype: jnp.float32 (exact) or jnp.bfloat16 (halves x / weight DMA
    bytes; recommended on v5e / v6e / v7x — MXU accumulates in f32 and all BN
    math stays f32).
    """
    (w1p, w2p, w3p, vec), dims = prepare_params(params, matmul_dtype)
    f0, h1p, h2p, ap = dims["f0"], dims["h1p"], dims["h2p"], dims["ap"]
    action_size = dims["action_size"]
    mm_bytes = jnp.dtype(matmul_dtype).itemsize

    vmem_spec = pl.BlockSpec(memory_space=pltpu.MemorySpace.VMEM)

    def forward(x):
        b = x.shape[0]
        x2d = x.reshape(b, -1).astype(matmul_dtype)      # nn.Flatten() + wrapper-side cast
        assert x2d.shape[1] == f0, "input feature size mismatch"

        cost = pl.CostEstimate(
            flops=2 * b * (f0 * h1p + h1p * h2p + h2p * ap),
            transcendentals=0,
            bytes_accessed=(x2d.size * mm_bytes
                            + (w1p.size + w2p.size + w3p.size) * mm_bytes
                            + vec.size * 4 + b * ap * 4),
        )

        # Everything (x, weights, activations, out) is VMEM-resident at once.
        # Size the scoped-VMEM limit from the live bytes (2x headroom), capped
        # at v7x's 64 MiB physical VMEM so the same code is safe on all chips.
        live = (x2d.size * mm_bytes
                + (w1p.size + w2p.size + w3p.size) * mm_bytes
                + vec.size * 4
                + b * (h1p + h2p + ap) * 4)
        vmem_limit = int(min(64 << 20, max(2 * live + (4 << 20), 32 << 20)))

        out_p = pl.pallas_call(
            _make_kernel(b, h1p, h2p, ap),
            out_shape=jax.ShapeDtypeStruct((b, ap), jnp.float32),
            in_specs=[vmem_spec] * 5,
            out_specs=vmem_spec,
            cost_estimate=cost,
            compiler_params=pltpu.CompilerParams(vmem_limit_bytes=vmem_limit),
        )(x2d, w1p, w2p, w3p, vec)

        return out_p[:, :action_size]

    return jax.jit(forward)


def init_params(key, state_size, hidden_layer_sizes, action_size):
    """Deterministic synthetic parameters (PyTorch-Linear shapes, pre-transposed)."""
    layer_dims = [state_size] + list(hidden_layer_sizes) + [action_size]
    params = []
    for i in range(len(layer_dims) - 1):
        d_in, d_out = layer_dims[i], layer_dims[i + 1]
        key, kw, kb = jax.random.split(key, 3)
        bound = 1.0 / jnp.sqrt(d_in)
        w = jax.random.uniform(kw, (d_in, d_out), jnp.float32, -bound, bound)  # (in, out)
        bias = jax.random.uniform(kb, (1, d_out), jnp.float32, -bound, bound)
        if i != len(layer_dims) - 2:
            gamma = jnp.ones((1, d_out), jnp.float32)   # BN weight
            beta = jnp.zeros((1, d_out), jnp.float32)   # BN bias
            params.append((w, bias, gamma, beta))
        else:
            params.append((w, bias))
    return tuple(params)


def reference_forward(x, params):
    """Pure-JAX reference mirroring the PyTorch forward (training-mode BN).

    Keeps the pre-BN biases so it also validates that dropping them in the
    kernel is exact.
    """
    h = x.reshape(x.shape[0], -1).astype(jnp.float32)
    (w1, b1, g1, be1), (w2, b2, g2, be2), (w3, b3) = params
    for (w, b, g, be) in ((w1, b1, g1, be1), (w2, b2, g2, be2)):
        h = h @ w + b
        mean = jnp.mean(h, axis=0, keepdims=True)
        var = jnp.mean((h - mean) ** 2, axis=0, keepdims=True)
        h = (h - mean) / jnp.sqrt(var + BN_EPS) * g + be
        h = jnp.maximum(h, 0.0)
    return h @ w3 + b3


if __name__ == "__main__":
    state_representation_size = 16
    hidden_layer_sizes = [32, 32]
    action_size = 8
    batch = 8

    key = jax.random.PRNGKey(0)
    key, kx = jax.random.split(key)
    x = jax.random.normal(kx, (batch, state_representation_size), jnp.float32)

    params = init_params(key, state_representation_size, hidden_layer_sizes, action_size)
    ref = reference_forward(x, params)

    # Exact (f32) path — strict check against the pure-JAX reference.
    fwd_f32 = make_rl_module_fn(params, matmul_dtype=jnp.float32)
    out = jax.block_until_ready(fwd_f32(x))
    assert out.shape == (batch, action_size)
    assert jnp.allclose(out, ref, atol=1e-4, rtol=1e-4), "mismatch vs reference (f32)"

    # bf16 weight/activation path (halves DMA bytes on all generations) — loose check.
    fwd_bf16 = make_rl_module_fn(params, matmul_dtype=jnp.bfloat16)
    out_bf16 = jax.block_until_ready(fwd_bf16(x))
    assert out_bf16.shape == (batch, action_size)
    assert bool(jnp.all(jnp.isfinite(out_bf16)))
    assert jnp.allclose(out_bf16, ref, atol=0.25, rtol=0.1), "mismatch vs reference (bf16)"

    print("KERNEL_OK")
</pallas_src>

<mosaic_0001>
module attributes {stable_mosaic.version = 11 : i64} {
  func.func @kernel(%arg0: memref<8x16xf32, #tpu.memory_space<vmem>>, %arg1: memref<16x128xf32, #tpu.memory_space<vmem>>, %arg2: memref<128x128xf32, #tpu.memory_space<vmem>>, %arg3: memref<128x128xf32, #tpu.memory_space<vmem>>, %arg4: memref<8x128xf32, #tpu.memory_space<vmem>>, %arg5: memref<8x128xf32, #tpu.memory_space<vmem>>) attributes {dimension_semantics = [], scalar_prefetch = 0 : i64, scratch_operands = 0 : i64, tpu.core_type = #tpu.core_type<tc>} {
    %c0 = arith.constant 0 : index
    %c0_0 = arith.constant 0 : index
    %0 = vector.load %arg0[%c0, %c0_0] : memref<8x16xf32, #tpu.memory_space<vmem>>, vector<8x16xf32>
    %c0_1 = arith.constant 0 : index
    %c0_2 = arith.constant 0 : index
    %1 = vector.load %arg1[%c0_1, %c0_2] : memref<16x128xf32, #tpu.memory_space<vmem>>, vector<16x128xf32>
    %cst = arith.constant dense<0.000000e+00> : vector<8x128xf32>
    %2 = tpu.matmul %0, %1, %cst {dimension_numbers = #tpu.dot_dimension_numbers<[1], [0], [0], [1], [0, 0, 1, 1], [], []>} : vector<8x16xf32>, vector<16x128xf32>, vector<8x128xf32> -> vector<8x128xf32>
    %c0_3 = arith.constant 0 : index
    %c0_4 = arith.constant 0 : index
    %3 = vector.load %arg4[%c0_3, %c0_4] : memref<8x128xf32, #tpu.memory_space<vmem>>, vector<1x128xf32>
    %c1 = arith.constant 1 : index
    %c0_5 = arith.constant 0 : index
    %4 = vector.load %arg4[%c1, %c0_5] : memref<8x128xf32, #tpu.memory_space<vmem>>, vector<1x128xf32>
    %cst_6 = arith.constant dense<0.000000e+00> : vector<128xf32>
    %5 = vector.multi_reduction <add>, %2, %cst_6 [0] : vector<8x128xf32> to vector<128xf32>
    %6 = vector.shape_cast %5 : vector<128xf32> to vector<1x128xf32>
    %cst_7 = arith.constant 1.250000e-01 : f32
    %7 = vector.broadcast %cst_7 : f32 to vector<1x128xf32>
    %8 = arith.mulf %6, %7 : vector<1x128xf32>
    %9 = arith.mulf %2, %2 : vector<8x128xf32>
    %cst_8 = arith.constant dense<0.000000e+00> : vector<128xf32>
    %10 = vector.multi_reduction <add>, %9, %cst_8 [0] : vector<8x128xf32> to vector<128xf32>
    %11 = vector.shape_cast %10 : vector<128xf32> to vector<1x128xf32>
    %cst_9 = arith.constant 1.250000e-01 : f32
    %12 = vector.broadcast %cst_9 : f32 to vector<1x128xf32>
    %13 = arith.mulf %11, %12 : vector<1x128xf32>
    %14 = arith.mulf %8, %8 : vector<1x128xf32>
    %15 = arith.subf %13, %14 : vector<1x128xf32>
    %cst_10 = arith.constant 0.000000e+00 : f32
    %16 = vector.broadcast %cst_10 : f32 to vector<1x128xf32>
    %17 = arith.maximumf %15, %16 : vector<1x128xf32>
    %cst_11 = arith.constant 9.99999974E-6 : f32
    %18 = vector.broadcast %cst_11 : f32 to vector<1x128xf32>
    %19 = arith.addf %17, %18 : vector<1x128xf32>
    %20 = math.rsqrt %19 : vector<1x128xf32>
    %21 = arith.mulf %3, %20 : vector<1x128xf32>
    %22 = arith.mulf %8, %21 : vector<1x128xf32>
    %23 = arith.subf %4, %22 : vector<1x128xf32>
    %24 = vector.broadcast %21 : vector<1x128xf32> to vector<8x128xf32>
    %25 = arith.mulf %2, %24 : vector<8x128xf32>
    %26 = vector.broadcast %23 : vector<1x128xf32> to vector<8x128xf32>
    %27 = arith.addf %25, %26 : vector<8x128xf32>
    %cst_12 = arith.constant 0.000000e+00 : f32
    %28 = vector.broadcast %cst_12 : f32 to vector<8x128xf32>
    %29 = arith.maximumf %27, %28 : vector<8x128xf32>
    %c0_13 = arith.constant 0 : index
    %c0_14 = arith.constant 0 : index
    %30 = vector.load %arg2[%c0_13, %c0_14] : memref<128x128xf32, #tpu.memory_space<vmem>>, vector<128x128xf32>
    %cst_15 = arith.constant dense<0.000000e+00> : vector<8x128xf32>
    %31 = tpu.matmul %29, %30, %cst_15 {dimension_numbers = #tpu.dot_dimension_numbers<[1], [0], [0], [1], [0, 0, 1, 1], [], []>} : vector<8x128xf32>, vector<128x128xf32>, vector<8x128xf32> -> vector<8x128xf32>
    %c2 = arith.constant 2 : index
    %c0_16 = arith.constant 0 : index
    %32 = vector.load %arg4[%c2, %c0_16] : memref<8x128xf32, #tpu.memory_space<vmem>>, vector<1x128xf32>
    %c3 = arith.constant 3 : index
    %c0_17 = arith.constant 0 : index
    %33 = vector.load %arg4[%c3, %c0_17] : memref<8x128xf32, #tpu.memory_space<vmem>>, vector<1x128xf32>
    %cst_18 = arith.constant dense<0.000000e+00> : vector<128xf32>
    %34 = vector.multi_reduction <add>, %31, %cst_18 [0] : vector<8x128xf32> to vector<128xf32>
    %35 = vector.shape_cast %34 : vector<128xf32> to vector<1x128xf32>
    %cst_19 = arith.constant 1.250000e-01 : f32
    %36 = vector.broadcast %cst_19 : f32 to vector<1x128xf32>
    %37 = arith.mulf %35, %36 : vector<1x128xf32>
    %38 = arith.mulf %31, %31 : vector<8x128xf32>
    %cst_20 = arith.constant dense<0.000000e+00> : vector<128xf32>
    %39 = vector.multi_reduction <add>, %38, %cst_20 [0] : vector<8x128xf32> to vector<128xf32>
    %40 = vector.shape_cast %39 : vector<128xf32> to vector<1x128xf32>
    %cst_21 = arith.constant 1.250000e-01 : f32
    %41 = vector.broadcast %cst_21 : f32 to vector<1x128xf32>
    %42 = arith.mulf %40, %41 : vector<1x128xf32>
    %43 = arith.mulf %37, %37 : vector<1x128xf32>
    %44 = arith.subf %42, %43 : vector<1x128xf32>
    %cst_22 = arith.constant 0.000000e+00 : f32
    %45 = vector.broadcast %cst_22 : f32 to vector<1x128xf32>
    %46 = arith.maximumf %44, %45 : vector<1x128xf32>
    %cst_23 = arith.constant 9.99999974E-6 : f32
    %47 = vector.broadcast %cst_23 : f32 to vector<1x128xf32>
    %48 = arith.addf %46, %47 : vector<1x128xf32>
    %49 = math.rsqrt %48 : vector<1x128xf32>
    %50 = arith.mulf %32, %49 : vector<1x128xf32>
    %51 = arith.mulf %37, %50 : vector<1x128xf32>
    %52 = arith.subf %33, %51 : vector<1x128xf32>
    %53 = vector.broadcast %50 : vector<1x128xf32> to vector<8x128xf32>
    %54 = arith.mulf %31, %53 : vector<8x128xf32>
    %55 = vector.broadcast %52 : vector<1x128xf32> to vector<8x128xf32>
    %56 = arith.addf %54, %55 : vector<8x128xf32>
    %cst_24 = arith.constant 0.000000e+00 : f32
    %57 = vector.broadcast %cst_24 : f32 to vector<8x128xf32>
    %58 = arith.maximumf %56, %57 : vector<8x128xf32>
    %c0_25 = arith.constant 0 : index
    %c0_26 = arith.constant 0 : index
    %59 = vector.load %arg3[%c0_25, %c0_26] : memref<128x128xf32, #tpu.memory_space<vmem>>, vector<128x128xf32>
    %cst_27 = arith.constant dense<0.000000e+00> : vector<8x128xf32>
    %60 = tpu.matmul %58, %59, %cst_27 {dimension_numbers = #tpu.dot_dimension_numbers<[1], [0], [0], [1], [0, 0, 1, 1], [], []>} : vector<8x128xf32>, vector<128x128xf32>, vector<8x128xf32> -> vector<8x128xf32>
    %c4 = arith.constant 4 : index
    %c0_28 = arith.constant 0 : index
    %61 = vector.load %arg4[%c4, %c0_28] : memref<8x128xf32, #tpu.memory_space<vmem>>, vector<1x128xf32>
    %62 = vector.broadcast %61 : vector<1x128xf32> to vector<8x128xf32>
    %63 = arith.addf %60, %62 : vector<8x128xf32>
    %c0_29 = arith.constant 0 : index
    %c0_30 = arith.constant 0 : index
    %64 = vector.load %arg5[%c0_29, %c0_30] : memref<8x128xf32, #tpu.memory_space<vmem>>, vector<8x128xf32>
    tpu.vector_store %arg5[%c0_29, %c0_30], %63 {strides = array<i32>} : memref<8x128xf32, #tpu.memory_space<vmem>>, vector<8x128xf32>,
    return
  }
}

</mosaic_0001>

<bundles_post_ra>
// kernel: forward.1
= control target key start
LH: loop header
LB: loop body
LE: loop exit
PB: predicated region body
PF: predicated region fallthrough
CT: control target
= control target key end

     0   :  { %10 = vsyncpa [#allocation3], 0  ;;  %s797_s0 = inlined_call_operand.hbm [shape: f32[8,16], index: 0, kind: input, shape index: {}]   ;;  %s798_s1 = inlined_call_operand.hbm [shape: f32[16,128], index: 1, kind: input, shape index: {}]   ;;  %s799_s2 = inlined_call_operand.hbm [shape: f32[128,128], index: 2, kind: input, shape index: {}]   ;;  %s800_s3 = inlined_call_operand.hbm [shape: f32[128,128], index: 3, kind: input, shape index: {}]   ;;  %s801_s4 = inlined_call_operand.hbm [shape: f32[8,128], index: 4, kind: input, shape index: {}]   ;;  %s802_s5 = inlined_call_operand.hbm [shape: f32[8,128], index: 5, kind: output, shape index: {}]  }
   0x1   :  { %11 = vsyncpa [#allocation6], 0 }
   0x2   :  { %12 = vsyncpa [#allocation9], 0 }
   0x3   :  { %13 = vsyncpa [#allocation4], 0  ;;  %s687_s18 = smov [#allocation5]  }
   0x4   :  { %s29_s19 = sshll.u32 %s687_s18, 4  ;;  %s30_s19 = int_to_ptr.vmem [resolvable:$true] %s29_s19 }
   0x5   :  { %s567_s20 = scalar_lea.vmem %s30_s19, 256  ;;  %p572_p1 = scmp.lt.s32.totalorder %s30_s19, %s30_s19 }
   0x6   :  { %p568_p0 = scmp.ne.s32.totalorder %s30_s19, %s567_s20  ;;  %p573_p2 = scmp.lt.s32.totalorder %s567_s20, %s567_s20 }
   0x8   :  { %p574_p3 = por %p573_p2, %p572_p1 }
   0xa   :  { %p575_p4 = pnand %p574_p3, %p568_p0 }
   0xc   :  { %578 = shalt.err (!%p575_p4)
}
   0xd   :  { %s688_s21 = smov 128   ;;  %s689_s22 = smov 8  }
   0xe   :  { %35 = dma.hbm_to_vmem [thread:$0]  %s798_s1, 256, %s30_s19, [#allocation6], %s688_s21, %s688_s21, %s689_s22  }
   0xf   :  { %s690_s25 = smov [#allocation8]   ;;  %s691_s27 = smov [#allocation2]  }
  0x10   :  { %s53_s26 = sshll.u32 %s690_s25, 4  ;;  %s20_s28 = sshll.u32 %s691_s27, 4  ;;  %s54_s26 = int_to_ptr.vmem [resolvable:$true] %s53_s26  ;;  %s21_s28 = int_to_ptr.vmem [resolvable:$true] %s20_s28 }
  0x11   :  { %s587_s29 = scalar_lea.vmem %s54_s26, 2048  ;;  %p592_p6 = scmp.lt.s32.totalorder %s54_s26, %s54_s26 }
  0x12   :  { %p588_p5 = scmp.ne.s32.totalorder %s54_s26, %s587_s29  ;;  %p593_p7 = scmp.lt.s32.totalorder %s587_s29, %s587_s29 }
  0x14   :  { %p594_p8 = por %p593_p7, %p592_p6 }
  0x16   :  { %p595_p9 = pnand %p594_p8, %p588_p5 }
  0x18   :  { %598 = shalt.err (!%p595_p9)
}
  0x19   :  { %59 = dma.hbm_to_vmem [thread:$0]  %s800_s3, 2048, %s54_s26, [#allocation9], %s688_s21, %s688_s21, %s689_s22  }
  0x1a   :  { %s607_s1 = scalar_lea.vmem %s21_s28, 128  ;;  %p612_p11 = scmp.lt.s32.totalorder %s21_s28, %s21_s28 }
  0x1b   :  { %p608_p10 = scmp.ne.s32.totalorder %s21_s28, %s607_s1  ;;  %p613_p12 = scmp.lt.s32.totalorder %s607_s1, %s607_s1 }
  0x1d   :  { %p614_p13 = por %p613_p12, %p612_p11 }
  0x1f   :  { %p615_p0 = pnand %p614_p13, %p608_p10 }
  0x21   :  { %618 = shalt.err (!%p615_p0)
}
  0x22   :  { %23 = dma.hbm_to_vmem [thread:$0]  %s797_s0, 128, %s21_s28, [#allocation3]  }
  0x23   :  { %s692_s9 = smov [#allocation7]   ;;  %s693_s11 = smov [#allocation10]  }
  0x24   :  { %s41_s10 = sshll.u32 %s692_s9, 4  ;;  %s66_s12 = sshll.u32 %s693_s11, 4  ;;  %s42_s10 = int_to_ptr.vmem [resolvable:$true] %s41_s10  ;;  %s67_s12 = int_to_ptr.vmem [resolvable:$true] %s66_s12 }
  0x25   :  { %s627_s13 = scalar_lea.vmem %s42_s10, 2048  ;;  %p632_p2 = scmp.lt.s32.totalorder %s42_s10, %s42_s10 }
  0x26   :  { %p628_p1 = scmp.ne.s32.totalorder %s42_s10, %s627_s13  ;;  %p633_p3 = scmp.lt.s32.totalorder %s627_s13, %s627_s13 }
  0x28   :  { %p634_p4 = por %p633_p3, %p632_p2 }
  0x2a   :  { %p635_p5 = pnand %p634_p4, %p628_p1 }
  0x2c   :  { %638 = shalt.err (!%p635_p5)
}
  0x2d   :  { %47 = dma.hbm_to_vmem [thread:$0]  %s799_s2, 2048, %s42_s10, [#allocation6], %s688_s21, %s688_s21, %s689_s22  }
  0x2e   :  { %s647_s0 = scalar_lea.vmem %s67_s12, 128  ;;  %p652_p7 = scmp.lt.s32.totalorder %s67_s12, %s67_s12 }
  0x2f   :  { %p648_p6 = scmp.ne.s32.totalorder %s67_s12, %s647_s0  ;;  %p653_p8 = scmp.lt.s32.totalorder %s647_s0, %s647_s0 }
  0x31   :  { %p654_p9 = por %p653_p8, %p652_p7 }
  0x33   :  { %p655_p10 = pnand %p654_p9, %p648_p6 }
  0x35   :  { %658 = shalt.err (!%p655_p10)
}
  0x36   :  { %69 = dma.hbm_to_vmem [thread:$0]  %s801_s4, 128, %s67_s12, [#allocation9]  }
  0x37   :  { %679 = dma.done.wait [#allocation3], 128  }
  0x38   :  { %680 = vsyncadd [#allocation3], 4294967168 }
  0x39   :  { %681 = dma.done.wait [#allocation6], 2304  }
  0x3a   :  { %682 = vsyncadd [#allocation6], 4294964992 }
  0x3b   :  { %683 = dma.done.wait [#allocation9], 2176  }
  0x3c   :  { %684 = vsyncadd [#allocation9], 4294965120  ;;  %v694_v0 = vmov 0.0   ;;  %vm695_vm0 = vmmov 0   ;;  %v87_v1 = vld [vmem:[#allocation5 + $0x8] sm:$0xff]  ;;  %v86_v2 = vld [vmem:[#allocation5] sm:$0xff]  ;;  %v187_v41 = vlaneseq }
  0x3d   :  { %468 = vmatprep.subr.mxu0 %v694_v0  ;;  %472 = vmatprep.mubr.msk.f32.mxu0 %vm695_vm0, %v694_v0  ;;  %v85_v3 = vld [vmem:[#allocation2] sm:$0xff]  ;;  %vm88_vm1 = vcmask 130048   ;;  %v213_v4 = vld [vmem:[#allocation7 + $0x78] sm:$0xff]  ;;  %v212_v5 = vld [vmem:[#allocation7 + $0x70] sm:$0xff]  ;;  %s696_s2 = smov [#allocation11]  }
  0x3e   :  { %475 = vmatprep.subr.mxu1 %v694_v0  ;;  %507 = vmatprep.mubr.msk.f32.mxu1 %vm695_vm0, %v694_v0  ;;  %v211_v6 = vld [vmem:[#allocation7 + $0x68] sm:$0xff]  ;;  %v210_v7 = vld [vmem:[#allocation7 + $0x60] sm:$0xff]  ;;  %v209_v8 = vld [vmem:[#allocation7 + $0x58] sm:$0xff]  ;;  %v188_v42 = vshrl.u32 %v187_v41, 7  ;;  %s418_s4 = sshll.u32 %s696_s2, 4  ;;  %s419_s4 = int_to_ptr.vmem [resolvable:$true] %s418_s4 }
  0x3f   :  { %469 = vmatpush3.msra.mxu0 %v87_v1  ;;  %476 = vmatpush3.msra.mxu1 %v213_v4  ;;  %v208_v9 = vld [vmem:[#allocation7 + $0x50] sm:$0xff]  ;;  %v207_v10 = vld [vmem:[#allocation7 + $0x48] sm:$0xff]  ;;  %v206_v11 = vld [vmem:[#allocation7 + $0x40] sm:$0xff]  ;;  %s659_s17 = scalar_lea.vmem %s419_s4, 128  ;;  %p664_p12 = scmp.lt.s32.totalorder %s419_s4, %s419_s4 }
  0x40   :  { %470 = vmatprep.subr.mxu0 %v694_v0  ;;  %477 = vmatprep.subr.mxu1 %v694_v0  ;;  %v205_v12 = vld [vmem:[#allocation7 + $0x38] sm:$0xff]  ;;  %v204_v13 = vld [vmem:[#allocation7 + $0x30] sm:$0xff]  ;;  %v203_v14 = vld [vmem:[#allocation7 + $0x28] sm:$0xff]  ;;  %v773_v44 = vsub.s32 0, %v188_v42  ;;  %p660_p11 = scmp.ne.s32.totalorder %s419_s4, %s659_s17  ;;  %p665_p13 = scmp.lt.s32.totalorder %s659_s17, %s659_s17 }
  0x41   :  { %471 = vmatpush3.msra.mxu0 %v86_v2  ;;  %478 = vmatpush3.msra.mxu1 %v212_v5  ;;  %v202_v15 = vld [vmem:[#allocation7 + $0x20] sm:$0xff]  ;;  %v201_v16 = vld [vmem:[#allocation7 + $0x18] sm:$0xff]  ;;  %v200_v17 = vld [vmem:[#allocation7 + $0x10] sm:$0xff] }
  0x42   :  { %473 = vmatmul.mubr.msk.f32.vlgmr.msra.gmra.mxu0 %vm88_vm1, %v85_v3  ;;  %510 = vmatprep.subr.mxu0 %v694_v0  ;;  %v199_v18 = vld [vmem:[#allocation7 + $0x8] sm:$0xff]  ;;  %v198_v19 = vld [vmem:[#allocation7] sm:$0xff]  ;;  %v335_v55 = vld [vmem:[#allocation8 + $0x78] sm:$0xff]  ;;  %p666_p0 = por %p665_p13, %p664_p12 }
  0x43   :  { %542 = vmatprep.mubr.msk.f32.mxu0 %vm695_vm0, %v694_v0  ;;  %479 = vmatprep.subr.mxu1 %v694_v0  ;;  %v162_v43 = vld [vmem:[#allocation10] sm:$0x1]  ;;  %v163_v47 = vld [vmem:[#allocation10 + $0x1] sm:$0x1]  ;;  %v334_v56 = vld [vmem:[#allocation8 + $0x70] sm:$0xff] }
  0x44   :  { %480 = vmatpush3.msra.mxu1 %v211_v6  ;;  %511 = vmatpush3.msra.mxu0 %v335_v55  ;;  %v333_v57 = vld [vmem:[#allocation8 + $0x68] sm:$0xff]  ;;  %v332_v58 = vld [vmem:[#allocation8 + $0x60] sm:$0xff]  ;;  %v331_v59 = vld [vmem:[#allocation8 + $0x58] sm:$0xff]  ;;  %p667_p1 = pnand %p666_p0, %p660_p11 }
  0x45   :  { %481 = vmatprep.subr.mxu1 %v694_v0  ;;  %512 = vmatprep.subr.mxu0 %v694_v0  ;;  %v330_v60 = vld [vmem:[#allocation8 + $0x50] sm:$0xff]  ;;  %v329_v61 = vld [vmem:[#allocation8 + $0x48] sm:$0xff]  ;;  %v328_v62 = vld [vmem:[#allocation8 + $0x40] sm:$0xff] }
  0x46   :  { %482 = vmatpush3.msra.mxu1 %v210_v7  ;;  %513 = vmatpush3.msra.mxu0 %v334_v56  ;;  %v327_v63 = vld [vmem:[#allocation8 + $0x38] sm:$0xff]  ;;  %v326_v1 = vld [vmem:[#allocation8 + $0x30] sm:$0xff]  ;;  %v325_v2 = vld [vmem:[#allocation8 + $0x28] sm:$0xff] }
  0x47   :  { %483 = vmatprep.subr.mxu1 %v694_v0  ;;  %514 = vmatprep.subr.mxu0 %v694_v0  ;;  %v324_v3 = vld [vmem:[#allocation8 + $0x20] sm:$0xff]  ;;  %v323_v4 = vld [vmem:[#allocation8 + $0x18] sm:$0xff]  ;;  %v322_v5 = vld [vmem:[#allocation8 + $0x10] sm:$0xff] }
  0x48   :  { %484 = vmatpush3.msra.mxu1 %v209_v8  ;;  %515 = vmatpush3.msra.mxu0 %v333_v57  ;;  %v321_v6 = vld [vmem:[#allocation8 + $0x8] sm:$0xff]  ;;  %v320_v7 = vld [vmem:[#allocation8] sm:$0xff] }
  0x49   :  { %485 = vmatprep.subr.mxu1 %v694_v0  ;;  %516 = vmatprep.subr.mxu0 %v694_v0 }
  0x4a   :  { %486 = vmatpush3.msra.mxu1 %v208_v9  ;;  %517 = vmatpush3.msra.mxu0 %v332_v58 }
  0x4b   :  { %487 = vmatprep.subr.mxu1 %v694_v0  ;;  %518 = vmatprep.subr.mxu0 %v694_v0 }
  0x4c   :  { %488 = vmatpush3.msra.mxu1 %v207_v10  ;;  %519 = vmatpush3.msra.mxu0 %v331_v59 }
  0x4d   :  { %489 = vmatprep.subr.mxu1 %v694_v0  ;;  %520 = vmatprep.subr.mxu0 %v694_v0 }
  0x4e   :  { %490 = vmatpush3.msra.mxu1 %v206_v11  ;;  %521 = vmatpush3.msra.mxu0 %v330_v60 }
  0x4f   :  { %491 = vmatprep.subr.mxu1 %v694_v0  ;;  %522 = vmatprep.subr.mxu0 %v694_v0 }
  0x50   :  { %492 = vmatpush3.msra.mxu1 %v205_v12  ;;  %523 = vmatpush3.msra.mxu0 %v329_v61 }
  0x51   :  { %493 = vmatprep.subr.mxu1 %v694_v0  ;;  %524 = vmatprep.subr.mxu0 %v694_v0 }
  0x52   :  { %494 = vmatpush3.msra.mxu1 %v204_v13  ;;  %525 = vmatpush3.msra.mxu0 %v328_v62 }
  0x53   :  { %495 = vmatprep.subr.mxu1 %v694_v0  ;;  %526 = vmatprep.subr.mxu0 %v694_v0 }
  0x54   :  { %496 = vmatpush3.msra.mxu1 %v203_v14  ;;  %527 = vmatpush3.msra.mxu0 %v327_v63 }
  0x55   :  { %497 = vmatprep.subr.mxu1 %v694_v0  ;;  %528 = vmatprep.subr.mxu0 %v694_v0 }
  0x56   :  { %498 = vmatpush3.msra.mxu1 %v202_v15  ;;  %529 = vmatpush3.msra.mxu0 %v326_v1 }
  0x57   :  { %499 = vmatprep.subr.mxu1 %v694_v0  ;;  %530 = vmatprep.subr.mxu0 %v694_v0 }
  0x58   :  { %500 = vmatpush3.msra.mxu1 %v201_v16  ;;  %531 = vmatpush3.msra.mxu0 %v325_v2 }
  0x59   :  { %501 = vmatprep.subr.mxu1 %v694_v0  ;;  %532 = vmatprep.subr.mxu0 %v694_v0 }
  0x5a   :  { %502 = vmatpush3.msra.mxu1 %v200_v17  ;;  %533 = vmatpush3.msra.mxu0 %v324_v3 }
  0x5b   :  { %503 = vmatprep.subr.mxu1 %v694_v0  ;;  %534 = vmatprep.subr.mxu0 %v694_v0 }
  0x5c   :  { %504 = vmatpush3.msra.mxu1 %v199_v18  ;;  %535 = vmatpush3.msra.mxu0 %v323_v4 }
  0x5d   :  { %505 = vmatprep.subr.mxu1 %v694_v0  ;;  %536 = vmatprep.subr.mxu0 %v694_v0 }
  0x5e   :  { %506 = vmatpush3.msra.mxu1 %v198_v19  ;;  %537 = vmatpush3.msra.mxu0 %v322_v5 }
  0x5f   :  { %538 = vmatprep.subr.mxu0 %v694_v0 }
  0x60   :  { %539 = vmatpush3.msra.mxu0 %v321_v6 }
  0x61   :  { %540 = vmatprep.subr.mxu0 %v694_v0 }
  0x62   :  { %541 = vmatpush3.msra.mxu0 %v320_v7 }
 0x102   :  { %v158_v20 = vpop.f32.mrf.mxu0 }
 0x103   :  { %v164_v21 = vrot.slane %v158_v20, 4  ;;  %v171_v22 = vmul.f32 %v158_v20, %v158_v20 }
 0x104   :  { %v474_v23 = vpop.f32.mrf.mxu0 }
 0x105   :  { %v165_v24 = vadd.f32 %v164_v21, %v158_v20  ;;  %v172_v25 = vrot.slane %v171_v22, 4 }
 0x107   :  { %v166_v26 = vrot.slane %v165_v24, 2  ;;  %v173_v27 = vadd.f32 %v172_v25, %v171_v22 }
 0x109   :  { %v167_v28 = vadd.f32 %v166_v26, %v165_v24  ;;  %v174_v29 = vrot.slane %v173_v27, 2 }
 0x10b   :  { %v168_v30 = vrot.slane %v167_v28, 1  ;;  %v175_v31 = vadd.f32 %v174_v29, %v173_v27 }
 0x10d   :  { %v169_v32 = vadd.f32 %v168_v30, %v167_v28  ;;  %v176_v33 = vrot.slane %v175_v31, 1  ;;  %v284_v28 = vld [vmem:[#allocation10 + $0x2] sm:$0x1] }
 0x10f   :  { %v170_v34 = vmul.f32 0.125, %v169_v32  ;;  %v177_v35 = vadd.f32 %v176_v33, %v175_v31  ;;  %v285_v31 = vld [vmem:[#allocation10 + $0x3] sm:$0x1] }
 0x111   :  { %v178_v36 = vmul.f32 0.125, %v177_v35  ;;  %v179_v37 = vmul.f32 %v170_v34, %v170_v34 }
 0x113   :  { %v180_v38 = vsub.f32 %v178_v36, %v179_v37 }
 0x115   :  { %v181_v39 = vmax.f32 %v180_v38, 0.0 }
 0x117   :  { %v182_v40 = vadd.f32 1e-05, %v181_v39  ;;  %v430_v39 = vld [vmem:[#allocation10 + $0x4] ss:$0 sm:$0xff] }
 0x119   :  { %555 = vrsqrt.f32 %v182_v40 }
 0x126   :  { %v556_v45 = vpop.eup %555 }
 0x127   :  { %v184_v46 = vmul.f32 %v556_v45, %v162_v43 }
 0x129   :  { %v190_v48 = vrot.slane %v184_v46, %v773_v44  ;;  %v185_v49 = vmul.f32 %v184_v46, %v170_v34 }
 0x12b   :  { %v186_v50 = vsub.f32 %v163_v47, %v185_v49  ;;  %v191_v51 = vmul.f32 %v190_v48, %v158_v20 }
 0x12d   :  { %v195_v52 = vrot.slane %v186_v50, %v773_v44 }
 0x12f   :  { %v196_v53 = vadd.f32 %v195_v52, %v191_v51 }
 0x131   :  { %v197_v54 = vmax.f32 %v196_v53, 0.0 }
 0x133   :  { %508 = vmatmul.mubr.f32.vlgmr.msra.gmra.mxu1 %v197_v54 }
 0x1f3   :  { %v280_v8 = vpop.f32.mrf.mxu1 }
 0x1f4   :  { %v286_v9 = vrot.slane %v280_v8, 4  ;;  %v293_v10 = vmul.f32 %v280_v8, %v280_v8 }
 0x1f5   :  { %v509_v11 = vpop.f32.mrf.mxu1 }
 0x1f6   :  { %v287_v12 = vadd.f32 %v286_v9, %v280_v8  ;;  %v294_v13 = vrot.slane %v293_v10, 4 }
 0x1f8   :  { %v288_v14 = vrot.slane %v287_v12, 2  ;;  %v295_v15 = vadd.f32 %v294_v13, %v293_v10 }
 0x1fa   :  { %v289_v16 = vadd.f32 %v288_v14, %v287_v12  ;;  %v296_v17 = vrot.slane %v295_v15, 2 }
 0x1fc   :  { %v290_v18 = vrot.slane %v289_v16, 1  ;;  %v297_v19 = vadd.f32 %v296_v17, %v295_v15 }
 0x1fe   :  { %v291_v20 = vadd.f32 %v290_v18, %v289_v16  ;;  %v298_v21 = vrot.slane %v297_v19, 1 }
 0x200   :  { %v292_v22 = vmul.f32 0.125, %v291_v20  ;;  %v299_v23 = vadd.f32 %v298_v21, %v297_v19 }
 0x202   :  { %v300_v24 = vmul.f32 0.125, %v299_v23  ;;  %v301_v25 = vmul.f32 %v292_v22, %v292_v22 }
 0x204   :  { %v302_v0 = vsub.f32 %v300_v24, %v301_v25 }
 0x206   :  { %v303_v26 = vmax.f32 %v302_v0, 0.0 }
 0x208   :  { %v304_v27 = vadd.f32 1e-05, %v303_v26 }
 0x20a   :  { %557 = vrsqrt.f32 %v304_v27 }
 0x217   :  { %v558_v29 = vpop.eup %557 }
 0x218   :  { %v306_v30 = vmul.f32 %v558_v29, %v284_v28 }
 0x21a   :  { %v307_v32 = vmul.f32 %v306_v30, %v292_v22  ;;  %v312_v33 = vrot.slane %v306_v30, %v773_v44 }
 0x21c   :  { %v308_v34 = vsub.f32 %v285_v31, %v307_v32  ;;  %v313_v35 = vmul.f32 %v312_v33, %v280_v8 }
 0x21e   :  { %v317_v36 = vrot.slane %v308_v34, %v773_v44 }
 0x220   :  { %v318_v37 = vadd.f32 %v317_v36, %v313_v35 }
 0x222   :  { %v319_v38 = vmax.f32 %v318_v37, 0.0 }
 0x224   :  { %543 = vmatmul.mubr.f32.vlgmr.msra.gmra.mxu0 %v319_v38 }
 0x2e4   :  { %v407_v40 = vpop.f32.mrf.mxu0 }
 0x2e5   :  { %v408_v41 = vadd.f32 %v430_v39, %v407_v40 }
 0x2e6   :  { %v544_v42 = vpop.f32.mrf.mxu0 }
 0x2e7   :  { %411 = vst [vmem:[#allocation11] sm:$0xff] %v408_v41 }
 0x2e8   :  { %670 = shalt.err (!%p667_p1)
}
 0x2e9   :  { %421 = dma.vmem_to_hbm [thread:$0]  %s419_s4, 128, %s802_s5, [#allocation4]  }
 0x2ea   :  { %685 = dma.done.wait [#allocation4], 128  }
 0x2eb   :  { %686 = vsyncadd [#allocation4], 4294967168 }
 0x2ec   :  { %425 = vsyncpa [#allocation3], 1 }
 0x2ed   :  { %426 = vsyncpa [#allocation6], 1 }
 0x2ee   :  { %427 = vsyncpa [#allocation9], 1 }
 0x2ef   :  { %428 = vsyncpa [#allocation4], 1 }

</bundles_post_ra>
